<compile_context>
chip_gen: v6e
topology: v6e:2x2x1
jax: 0.10.0
libtpu: 0.0.40
codegen_flags: <defaults>
</compile_context>

<pallas_src>
import jax
import jax.numpy as jnp
from jax.experimental import pallas as pl
from jax.experimental.pallas import tpu as pltpu


# ----------------------------------------------------------------------------
# Parameter construction (mirrors IndicateVisitedPosition.__init__ exactly)
# ----------------------------------------------------------------------------
def build_indicate_visited_position_params(slices):
    (d_in, w_pos, st_, sym1_, sym2_, pos1_, pos2_, pos3_,
     scr1_, scr2_, scr3_, scr4_, scr5_) = slices

    w_q = jnp.zeros((w_pos + 1, d_in), dtype=jnp.float32)
    b_q = -jnp.ones((w_pos + 1,), dtype=jnp.float32)
    for k in range(w_pos):
        w_q = w_q.at[k, pos3_ + k].set(2.0)
    b_q = b_q.at[w_pos].set(1.0)

    w_k = jnp.zeros((w_pos + 1, d_in), dtype=jnp.float32)
    b_k = -jnp.ones((w_pos + 1,), dtype=jnp.float32)
    for k in range(w_pos):
        w_k = w_k.at[k, pos2_ + k].set(2.0)
    b_k = b_k.at[w_pos].set(0.0)

    w_v = jnp.zeros((d_in, d_in), dtype=jnp.float32)
    b_v = jnp.zeros((d_in,), dtype=jnp.float32).at[scr4_].set(1.0)

    k_0 = jnp.zeros((w_pos + 1,), dtype=jnp.float32).at[w_pos].set(w_pos - 1.0)
    v_0 = jnp.zeros((d_in,), dtype=jnp.float32)

    return w_q, b_q, w_k, b_k, w_v, b_v, k_0, v_0


def prepare_params(w_q, b_q, w_k, b_k, w_v, b_v, k_0, v_0):
    """One-time layout work: transpose to x@W^T form, reshape biases to row
    vectors, and zero-pad the tiny q/k head dim up to a lane-dense 128.
    Padding is exact: padded q/k/k_0 columns are all zero, contributing 0 to
    every dot product."""
    dk, d_in = w_q.shape
    dkp = 128 * ((dk + 127) // 128)
    pad = dkp - dk
    f32 = jnp.float32

    wqT = jnp.pad(w_q, ((0, pad), (0, 0))).T.astype(f32)          # (d_in, dkp)
    bq = jnp.pad(b_q, (0, pad)).reshape(1, dkp).astype(f32)
    wkT = jnp.pad(w_k, ((0, pad), (0, 0))).T.astype(f32)          # (d_in, dkp)
    bk = jnp.pad(b_k, (0, pad)).reshape(1, dkp).astype(f32)
    wvT = w_v.T.astype(f32)                                       # (d_in, d_in)
    bv = b_v.reshape(1, d_in).astype(f32)
    k0 = jnp.pad(k_0, (0, pad)).reshape(1, dkp).astype(f32)
    v0 = v_0.reshape(1, d_in).astype(f32)
    return wqT, bq, wkT, bk, wvT, bv, k0, v0


# ----------------------------------------------------------------------------
# Pallas kernel: out = x + softmax(q [k0;k]^T) @ [v0;v]   (per query tile)
# ----------------------------------------------------------------------------
def ivp_kernel(xq_ref, xkv_ref, wqT_ref, bq_ref, wkT_ref, bk_ref,
               wvT_ref, bv_ref, k0_ref, v0_ref, o_ref):
    xq = xq_ref[...]            # (TQ, d_in)   query rows of this tile
    xkv = xkv_ref[...]          # (S,  d_in)   all key/value rows

    # Projections (MXU), f32 accumulation; biases broadcast over rows.
    q = jnp.dot(xq, wqT_ref[...], preferred_element_type=jnp.float32) + bq_ref[...]
    k = jnp.dot(xkv, wkT_ref[...], preferred_element_type=jnp.float32) + bk_ref[...]
    v = jnp.dot(xkv, wvT_ref[...], preferred_element_type=jnp.float32) + bv_ref[...]

    # Scores vs real keys (TQ, S) and vs the prepended null key (TQ, 1).
    s = jnp.einsum("qe,ke->qk", q, k, preferred_element_type=jnp.float32)
    s0 = jnp.sum(q * k0_ref[...], axis=-1, keepdims=True)

    # Numerically-stable softmax over [null key, real keys].
    m = jnp.maximum(jnp.max(s, axis=-1, keepdims=True), s0)
    e = jnp.exp(s - m)
    e0 = jnp.exp(s0 - m)
    denom = e0 + jnp.sum(e, axis=-1, keepdims=True)
    num = e0 * v0_ref[...] + jnp.dot(e, v, preferred_element_type=jnp.float32)

    # Residual add (the module's `x += attention(...)`).
    o_ref[...] = (xq + num / denom).astype(o_ref.dtype)


def indicate_visited_position_forward(x, prepared, *, tq_max=512):
    """x: (B, S, d_in) float32; prepared: output of prepare_params."""
    wqT, bq, wkT, bk, wvT, bv, k0, v0 = prepared
    B, S, d_in = x.shape
    dkp = wqT.shape[1]

    # Query-tile size: full sequence when small, otherwise a large multiple of 8
    # that keeps double-buffered (xq + xkv + out) blocks well inside scoped VMEM
    # on v5e (16 MiB) and v7x (32 MiB scoped / 64 MiB physical).
    TQ = S if S <= tq_max else tq_max
    grid = (B, pl.cdiv(S, TQ))

    full = lambda b, qi: (0, 0)
    cost = pl.CostEstimate(
        flops=int(B * S * (4 * d_in * dkp + 2 * d_in * d_in + 2 * S * (dkp + d_in))),
        transcendentals=int(B * S * (S + 1)),
        bytes_accessed=int(8 * B * S * d_in),
    )

    return pl.pallas_call(
        ivp_kernel,
        out_shape=jax.ShapeDtypeStruct((B, S, d_in), x.dtype),
        grid=grid,
        in_specs=[
            pl.BlockSpec((None, TQ, d_in), lambda b, qi: (b, qi, 0)),  # x (query rows)
            pl.BlockSpec((None, S, d_in), lambda b, qi: (b, 0, 0)),    # x (key/value rows)
            pl.BlockSpec((d_in, dkp), full),                           # w_q^T (dk-padded)
            pl.BlockSpec((1, dkp), full),                              # b_q
            pl.BlockSpec((d_in, dkp), full),                           # w_k^T
            pl.BlockSpec((1, dkp), full),                              # b_k
            pl.BlockSpec((d_in, d_in), full),                          # w_v^T
            pl.BlockSpec((1, d_in), full),                             # b_v
            pl.BlockSpec((1, dkp), full),                              # k_0
            pl.BlockSpec((1, d_in), full),                             # v_0
        ],
        out_specs=pl.BlockSpec((None, TQ, d_in), lambda b, qi: (b, qi, 0)),
        compiler_params=pltpu.CompilerParams(
            dimension_semantics=("parallel", "parallel")),
        cost_estimate=cost,
    )(x, x, wqT, bq, wkT, bk, wvT, bv, k0, v0)


# ----------------------------------------------------------------------------
# Pure-JAX reference of the PyTorch forward
# ----------------------------------------------------------------------------
def reference_forward(x, w_q, b_q, w_k, b_k, w_v, b_v, k_0, v_0):
    B, S, d_in = x.shape
    dk = w_q.shape[0]
    hp = jax.lax.Precision.HIGHEST
    q = jnp.einsum("bsd,ed->bse", x, w_q, precision=hp) + b_q
    k = jnp.einsum("bsd,ed->bse", x, w_k, precision=hp) + b_k
    v = jnp.einsum("bsd,ed->bse", x, w_v, precision=hp) + b_v
    keys = jnp.concatenate([jnp.broadcast_to(k_0, (B, 1, dk)), k], axis=1)
    vals = jnp.concatenate([jnp.broadcast_to(v_0, (B, 1, d_in)), v], axis=1)
    scores = jnp.einsum("bqe,bke->bqk", q, keys, precision=hp)
    attn = jax.nn.softmax(scores, axis=-1)
    return x + jnp.einsum("bqk,bkd->bqd", attn, vals, precision=hp)


# ----------------------------------------------------------------------------
# Demo / self-check
# ----------------------------------------------------------------------------
if __name__ == "__main__":
    # slices = (d_in, w_pos, st_, sym1_, sym2_, pos1_, pos2_, pos3_,
    #           scr1_, scr2_, scr3_, scr4_, scr5_)
    d_in = 32
    slices = (d_in, 2, 4, 8, 12, 12, 13, 14, 16, 20, 24, 26, 29)

    params = build_indicate_visited_position_params(slices)
    prepared = prepare_params(*params)   # hoisted: runs once at init time

    key = jax.random.PRNGKey(0)
    x = jax.random.uniform(key, (2, 8, d_in), dtype=jnp.float32)  # (B=2, S=8, d_in=32)

    out = indicate_visited_position_forward(x, prepared)
    out = jax.block_until_ready(out)

    ref = reference_forward(x, *params)
    assert out.shape == x.shape
    assert jnp.allclose(out, ref, atol=1e-4, rtol=1e-4), (
        "mismatch vs reference: max abs err = "
        f"{float(jnp.max(jnp.abs(out - ref)))}")

    print("KERNEL_OK")
</pallas_src>

<mosaic_0001>
module attributes {stable_mosaic.version = 11 : i64} {
  func.func @ivp_kernel(%arg0: i32, %arg1: i32, %arg2: memref<1x8x32xf32, #tpu.memory_space<vmem>>, %arg3: memref<1x8x32xf32, #tpu.memory_space<vmem>>, %arg4: memref<32x128xf32, #tpu.memory_space<vmem>>, %arg5: memref<1x128xf32, #tpu.memory_space<vmem>>, %arg6: memref<32x128xf32, #tpu.memory_space<vmem>>, %arg7: memref<1x128xf32, #tpu.memory_space<vmem>>, %arg8: memref<32x32xf32, #tpu.memory_space<vmem>>, %arg9: memref<1x32xf32, #tpu.memory_space<vmem>>, %arg10: memref<1x128xf32, #tpu.memory_space<vmem>>, %arg11: memref<1x32xf32, #tpu.memory_space<vmem>>, %arg12: memref<1x8x32xf32, #tpu.memory_space<vmem>>) attributes {dimension_semantics = [#tpu.dimension_semantics<parallel>, #tpu.dimension_semantics<parallel>], iteration_bounds = array<i64: 2, 1>, scalar_prefetch = 0 : i64, scratch_operands = 0 : i64, tpu.core_type = #tpu.core_type<tc>, window_params = [{transform_indices = @transform_0, window_bounds = array<i64: 1, 8, 32>}, {transform_indices = @transform_1, window_bounds = array<i64: 1, 8, 32>}, {pipeline_mode = #tpu.pipeline_mode<synchronous>, transform_indices = @transform_2, window_bounds = array<i64: 32, 128>}, {pipeline_mode = #tpu.pipeline_mode<synchronous>, transform_indices = @transform_3, window_bounds = array<i64: 1, 128>}, {pipeline_mode = #tpu.pipeline_mode<synchronous>, transform_indices = @transform_4, window_bounds = array<i64: 32, 128>}, {pipeline_mode = #tpu.pipeline_mode<synchronous>, transform_indices = @transform_5, window_bounds = array<i64: 1, 128>}, {pipeline_mode = #tpu.pipeline_mode<synchronous>, transform_indices = @transform_6, window_bounds = array<i64: 32, 32>}, {pipeline_mode = #tpu.pipeline_mode<synchronous>, transform_indices = @transform_7, window_bounds = array<i64: 1, 32>}, {pipeline_mode = #tpu.pipeline_mode<synchronous>, transform_indices = @transform_8, window_bounds = array<i64: 1, 128>}, {pipeline_mode = #tpu.pipeline_mode<synchronous>, transform_indices = @transform_9, window_bounds = array<i64: 1, 32>}, {transform_indices = @transform_10, window_bounds = array<i64: 1, 8, 32>}]} {
    %c0 = arith.constant 0 : index
    %c0_0 = arith.constant 0 : index
    %c0_1 = arith.constant 0 : index
    %0 = vector.load %arg2[%c0, %c0_0, %c0_1] : memref<1x8x32xf32, #tpu.memory_space<vmem>>, vector<1x8x32xf32>
    %1 = vector.shape_cast %0 : vector<1x8x32xf32> to vector<8x32xf32>
    %c0_2 = arith.constant 0 : index
    %c0_3 = arith.constant 0 : index
    %c0_4 = arith.constant 0 : index
    %2 = vector.load %arg3[%c0_2, %c0_3, %c0_4] : memref<1x8x32xf32, #tpu.memory_space<vmem>>, vector<1x8x32xf32>
    %3 = vector.shape_cast %2 : vector<1x8x32xf32> to vector<8x32xf32>
    %c0_5 = arith.constant 0 : index
    %c0_6 = arith.constant 0 : index
    %4 = vector.load %arg4[%c0_5, %c0_6] : memref<32x128xf32, #tpu.memory_space<vmem>>, vector<32x128xf32>
    %cst = arith.constant dense<0.000000e+00> : vector<8x128xf32>
    %5 = tpu.matmul %1, %4, %cst {dimension_numbers = #tpu.dot_dimension_numbers<[1], [0], [0], [1], [0, 0, 1, 1], [], []>} : vector<8x32xf32>, vector<32x128xf32>, vector<8x128xf32> -> vector<8x128xf32>
    %c0_7 = arith.constant 0 : index
    %c0_8 = arith.constant 0 : index
    %6 = vector.load %arg5[%c0_7, %c0_8] : memref<1x128xf32, #tpu.memory_space<vmem>>, vector<1x128xf32>
    %7 = vector.broadcast %6 : vector<1x128xf32> to vector<8x128xf32>
    %8 = arith.addf %5, %7 : vector<8x128xf32>
    %c0_9 = arith.constant 0 : index
    %c0_10 = arith.constant 0 : index
    %9 = vector.load %arg6[%c0_9, %c0_10] : memref<32x128xf32, #tpu.memory_space<vmem>>, vector<32x128xf32>
    %cst_11 = arith.constant dense<0.000000e+00> : vector<8x128xf32>
    %10 = tpu.matmul %3, %9, %cst_11 {dimension_numbers = #tpu.dot_dimension_numbers<[1], [0], [0], [1], [0, 0, 1, 1], [], []>} : vector<8x32xf32>, vector<32x128xf32>, vector<8x128xf32> -> vector<8x128xf32>
    %c0_12 = arith.constant 0 : index
    %c0_13 = arith.constant 0 : index
    %11 = vector.load %arg7[%c0_12, %c0_13] : memref<1x128xf32, #tpu.memory_space<vmem>>, vector<1x128xf32>
    %12 = vector.broadcast %11 : vector<1x128xf32> to vector<8x128xf32>
    %13 = arith.addf %10, %12 : vector<8x128xf32>
    %c0_14 = arith.constant 0 : index
    %c0_15 = arith.constant 0 : index
    %14 = vector.load %arg8[%c0_14, %c0_15] : memref<32x32xf32, #tpu.memory_space<vmem>>, vector<32x32xf32>
    %cst_16 = arith.constant dense<0.000000e+00> : vector<8x32xf32>
    %15 = tpu.matmul %3, %14, %cst_16 {dimension_numbers = #tpu.dot_dimension_numbers<[1], [0], [0], [1], [0, 0, 1, 1], [], []>} : vector<8x32xf32>, vector<32x32xf32>, vector<8x32xf32> -> vector<8x32xf32>
    %c0_17 = arith.constant 0 : index
    %c0_18 = arith.constant 0 : index
    %16 = vector.load %arg9[%c0_17, %c0_18] : memref<1x32xf32, #tpu.memory_space<vmem>>, vector<1x32xf32>
    %17 = vector.broadcast %16 : vector<1x32xf32> to vector<8x32xf32>
    %18 = arith.addf %15, %17 : vector<8x32xf32>
    "tpu.trace_start"() <{level = 10 : i32, message = "qe,ke->qk"}> : () -> ()
    %cst_19 = arith.constant dense<0.000000e+00> : vector<8x8xf32>
    %19 = tpu.matmul %8, %13, %cst_19 {dimension_numbers = #tpu.dot_dimension_numbers<[1], [1], [0], [0], [0, 0, 1, 0], [], []>} : vector<8x128xf32>, vector<8x128xf32>, vector<8x8xf32> -> vector<8x8xf32>
    "tpu.trace_stop"() : () -> ()
    %c0_20 = arith.constant 0 : index
    %c0_21 = arith.constant 0 : index
    %20 = vector.load %arg10[%c0_20, %c0_21] : memref<1x128xf32, #tpu.memory_space<vmem>>, vector<1x128xf32>
    %21 = vector.broadcast %20 : vector<1x128xf32> to vector<8x128xf32>
    %22 = arith.mulf %8, %21 : vector<8x128xf32>
    %cst_22 = arith.constant dense<0.000000e+00> : vector<8xf32>
    %23 = vector.multi_reduction <add>, %22, %cst_22 [1] : vector<8x128xf32> to vector<8xf32>
    %24 = vector.shape_cast %23 : vector<8xf32> to vector<8x1xf32>
    %cst_23 = arith.constant dense<0xFF800000> : vector<8xf32>
    %25 = vector.multi_reduction <maximumf>, %19, %cst_23 [1] : vector<8x8xf32> to vector<8xf32>
    %26 = vector.shape_cast %25 : vector<8xf32> to vector<8x1xf32>
    %27 = arith.maximumf %26, %24 : vector<8x1xf32>
    %28 = vector.broadcast %27 : vector<8x1xf32> to vector<8x8xf32>
    %29 = arith.subf %19, %28 : vector<8x8xf32>
    %30 = math.exp %29 : vector<8x8xf32>
    %31 = arith.subf %24, %27 : vector<8x1xf32>
    %32 = math.exp %31 : vector<8x1xf32>
    %cst_24 = arith.constant dense<0.000000e+00> : vector<8xf32>
    %33 = vector.multi_reduction <add>, %30, %cst_24 [1] : vector<8x8xf32> to vector<8xf32>
    %34 = vector.shape_cast %33 : vector<8xf32> to vector<8x1xf32>
    %35 = arith.addf %32, %34 : vector<8x1xf32>
    %c0_25 = arith.constant 0 : index
    %c0_26 = arith.constant 0 : index
    %36 = vector.load %arg11[%c0_25, %c0_26] : memref<1x32xf32, #tpu.memory_space<vmem>>, vector<1x32xf32>
    %37 = vector.broadcast %32 : vector<8x1xf32> to vector<8x32xf32>
    %38 = vector.broadcast %36 : vector<1x32xf32> to vector<8x32xf32>
    %39 = arith.mulf %37, %38 : vector<8x32xf32>
    %cst_27 = arith.constant dense<0.000000e+00> : vector<8x32xf32>
    %40 = tpu.matmul %30, %18, %cst_27 {dimension_numbers = #tpu.dot_dimension_numbers<[1], [0], [0], [1], [0, 0, 1, 1], [], []>} : vector<8x8xf32>, vector<8x32xf32>, vector<8x32xf32> -> vector<8x32xf32>
    %41 = arith.addf %39, %40 : vector<8x32xf32>
    %42 = vector.broadcast %35 : vector<8x1xf32> to vector<8x32xf32>
    %43 = arith.divf %41, %42 : vector<8x32xf32>
    %44 = arith.addf %1, %43 : vector<8x32xf32>
    %c0_28 = arith.constant 0 : index
    %c0_29 = arith.constant 0 : index
    %c0_30 = arith.constant 0 : index
    %45 = vector.load %arg12[%c0_28, %c0_29, %c0_30] : memref<1x8x32xf32, #tpu.memory_space<vmem>>, vector<1x8x32xf32>
    %46 = vector.shape_cast %45 : vector<1x8x32xf32> to vector<8x32xf32>
    %47 = vector.shape_cast %44 : vector<8x32xf32> to vector<1x8x32xf32>
    tpu.vector_store %arg12[%c0_28, %c0_29, %c0_30], %47 {strides = array<i32>} : memref<1x8x32xf32, #tpu.memory_space<vmem>>, vector<1x8x32xf32>,
    return
  }
  func.func @transform_0(%arg0: i32, %arg1: i32) -> (i32, i32, i32) {
    %c0_i32 = arith.constant 0 : i32
    %c0_i32_0 = arith.constant 0 : i32
    return %arg0, %arg1, %c0_i32 : i32, i32, i32
  }
  func.func @transform_1(%arg0: i32, %arg1: i32) -> (i32, i32, i32) {
    %c0_i32 = arith.constant 0 : i32
    %c0_i32_0 = arith.constant 0 : i32
    %c0_i32_1 = arith.constant 0 : i32
    return %arg0, %c0_i32, %c0_i32_0 : i32, i32, i32
  }
  func.func @transform_2(%arg0: i32, %arg1: i32) -> (i32, i32) {
    %c0_i32 = arith.constant 0 : i32
    %c0_i32_0 = arith.constant 0 : i32
    %c0_i32_1 = arith.constant 0 : i32
    return %c0_i32, %c0_i32_0 : i32, i32
  }
  func.func @transform_3(%arg0: i32, %arg1: i32) -> (i32, i32) {
    %c0_i32 = arith.constant 0 : i32
    %c0_i32_0 = arith.constant 0 : i32
    %c0_i32_1 = arith.constant 0 : i32
    return %c0_i32, %c0_i32_0 : i32, i32
  }
  func.func @transform_4(%arg0: i32, %arg1: i32) -> (i32, i32) {
    %c0_i32 = arith.constant 0 : i32
    %c0_i32_0 = arith.constant 0 : i32
    %c0_i32_1 = arith.constant 0 : i32
    return %c0_i32, %c0_i32_0 : i32, i32
  }
  func.func @transform_5(%arg0: i32, %arg1: i32) -> (i32, i32) {
    %c0_i32 = arith.constant 0 : i32
    %c0_i32_0 = arith.constant 0 : i32
    %c0_i32_1 = arith.constant 0 : i32
    return %c0_i32, %c0_i32_0 : i32, i32
  }
  func.func @transform_6(%arg0: i32, %arg1: i32) -> (i32, i32) {
    %c0_i32 = arith.constant 0 : i32
    %c0_i32_0 = arith.constant 0 : i32
    %c0_i32_1 = arith.constant 0 : i32
    return %c0_i32, %c0_i32_0 : i32, i32
  }
  func.func @transform_7(%arg0: i32, %arg1: i32) -> (i32, i32) {
    %c0_i32 = arith.constant 0 : i32
    %c0_i32_0 = arith.constant 0 : i32
    %c0_i32_1 = arith.constant 0 : i32
    return %c0_i32, %c0_i32_0 : i32, i32
  }
  func.func @transform_8(%arg0: i32, %arg1: i32) -> (i32, i32) {
    %c0_i32 = arith.constant 0 : i32
    %c0_i32_0 = arith.constant 0 : i32
    %c0_i32_1 = arith.constant 0 : i32
    return %c0_i32, %c0_i32_0 : i32, i32
  }
  func.func @transform_9(%arg0: i32, %arg1: i32) -> (i32, i32) {
    %c0_i32 = arith.constant 0 : i32
    %c0_i32_0 = arith.constant 0 : i32
    %c0_i32_1 = arith.constant 0 : i32
    return %c0_i32, %c0_i32_0 : i32, i32
  }
  func.func @transform_10(%arg0: i32, %arg1: i32) -> (i32, i32, i32) {
    %c0_i32 = arith.constant 0 : i32
    %c0_i32_0 = arith.constant 0 : i32
    return %arg0, %arg1, %c0_i32 : i32, i32, i32
  }
}

</mosaic_0001>

<bundles_post_ra>
// kernel: tpu_custom_call.1
= control target key start
LH: loop header
LB: loop body
LE: loop exit
PB: predicated region body
PF: predicated region fallthrough
CT: control target
= control target key end

     0   :  { %s1787_s0 = inlined_call_operand.hbm [shape: f32[2,8,32], index: 0, kind: input, shape index: {}]   ;;  %s1788_s1 = inlined_call_operand.hbm [shape: f32[2,8,32], index: 1, kind: input, shape index: {}]   ;;  %s1789_s2 = inlined_call_operand.hbm [shape: f32[32,128], index: 2, kind: input, shape index: {}]   ;;  %s1790_s3 = inlined_call_operand.vmem [shape: f32[1,128], index: 3, kind: input, shape index: {}]   ;;  %s1791_s4 = inlined_call_operand.hbm [shape: f32[32,128], index: 4, kind: input, shape index: {}]   ;;  %s1792_s5 = inlined_call_operand.vmem [shape: f32[1,128], index: 5, kind: input, shape index: {}]   ;;  %s1793_s6 = inlined_call_operand.hbm [shape: f32[32,32], index: 6, kind: input, shape index: {}]   ;;  %s1794_s7 = inlined_call_operand.vmem [shape: f32[1,32], index: 7, kind: input, shape index: {}]   ;;  %s1795_s8 = inlined_call_operand.vmem [shape: f32[1,128], index: 8, kind: input, shape index: {}]   ;;  %s1796_s9 = inlined_call_operand.vmem [shape: f32[1,32], index: 9, kind: input, shape index: {}]   ;;  %s1797_s10 = inlined_call_operand.hbm [shape: f32[2,8,32], index: 10, kind: output, shape index: {}]  }
   0x1   :  { %1804 = sst [smem:[#allocation20_spill]] %s1787_s0 }
   0x2   :  { %1805 = sst [smem:[#allocation21_spill]] %s1789_s2 }
   0x3   :  { %1806 = sst [smem:[#allocation22_spill]] %s1791_s4 }
   0x4   :  { %1807 = sst [smem:[#allocation23_spill]] %s1793_s6 }
   0x5   :  { %1808 = sst [smem:[#allocation24_spill]] %s1797_s10 }
   0x6   :  { %15 = vsyncpa [#allocation3], 0 }
   0x7   :  { %17 = vsyncpa [#allocation3 + $0x1], 0 }
   0x8   :  { %18 = vsyncpa [#allocation6], 0 }
   0x9   :  { %20 = vsyncpa [#allocation6 + $0x1], 0 }
   0xa   :  { %21 = vsyncpa [#allocation9], 0 }
   0xb   :  { %22 = vsyncpa [#allocation4], 0 }
   0xc   :  { %24 = vsyncpa [#allocation4 + $0x1], 0  ;;  %s1545_s13 = smov 0   ;;  %s1547_s14 = smov 0  }
   0xd   :  { %s1549_s15 = smov 0   ;;  %s1551_s16 = smov 0  }
   0xe   :  { %s1553_s17 = smov 0   ;;  %s1555_s18 = smov 0  }
   0xf LB: > { %1809 = sst [smem:[#allocation17_spill]] %s1458_s13  ;;  %s1576_s19 = sadd.s32 4294967295, %s1478_s18   ;;  %s1478_s18 = sphi %s1555_s18, %s30_s18   ;;  %s1474_s17 = sphi %s1553_s17, %s1838_s17   ;;  %s1470_s16 = sphi %s1551_s16, %s1837_s16   ;;  %s1466_s15 = sphi %s1549_s15, %s1836_s15   ;;  %s1462_s14 = sphi %s1547_s14, %s1835_s14   ;;  %s1458_s13 = sphi %s1545_s13, %s1834_s13  }
  0x10   : > { %s1052_s20 = sadd.s32 4294967294, %s1478_s18   ;;  %p64_p0 = scmp.ne.s32.totalorder %s1462_s14, %s1458_s13 }
  0x11   : > { %p1798_p1 = scmp.eq.s32.totalorder %s1576_s19, 0  ;;  %p290_p3 = scmp.eq.s32.totalorder %s1052_s20, 1 }
  0x12   : > { %p1053_p5 = scmp.ge.s32.totalorder %s1478_s18, 1  ;;  %p297_p7 = scmp.lt.s32.totalorder %s1478_s18, 3 }
  0x13   : > { %p1585_p4 = por %p1798_p1, %p64_p0  ;;  %p1590_p6 = por %p290_p3, %p64_p0 }
  0x14   : > { %p1595_p8 = pnand %p1053_p5, %p297_p7  ;;  %s1480_s24 = smov [#allocation7]  }
  0x15   : > { %s1810_s21 = scalar_select %p1585_p4, 1, 0 }
  0x16   : > { %s1811_s22 = scalar_select %p1590_p6, 1, 0 }
  0x17   : > { %s309_s25 = sshll.u32 %s1480_s24, 4  ;;  %p1162_p9 = pneg %p1595_p8  ;;  %s310_s25 = int_to_ptr.vmem [resolvable:$true] %s309_s25 }
  0x18   : > { %1812 = sst [smem:[#allocation18_spill]] %s1811_s22  ;;  %s1481_s27 = smov [#allocation8]  }
  0x19   : > { %p1604_p11 = pnand %p1162_p9, %p1798_p1  ;;  %s325_s28 = sshll.u32 %s1481_s27, 4  ;;  %s326_s28 = int_to_ptr.vmem [resolvable:$true] %s325_s28 }
  0x1a   : > { %s1482_s29 = smov [#allocation10]   ;;  %s1263_s11 = scalar_lea.vmem %s310_s25, 512 }
  0x1b   : > { %s341_s30 = sshll.u32 %s1482_s29, 4  ;;  %p1254_p12 = pneg %p1604_p11  ;;  %s342_s30 = int_to_ptr.vmem [resolvable:$true] %s341_s30 }
  0x1c   : > { %p1264_p13 = scmp.ne.s32.totalorder %s310_s25, %s1263_s11  ;;  %p1271_p5 = scmp.lt.s32.totalorder %s310_s25, %s310_s25 }
  0x1d   : > { %p1272_p7 = scmp.lt.s32.totalorder %s1263_s11, %s1263_s11 }
  0x1e   : > { %p1266_p0 = pnand %p1264_p13, %p1254_p12 }
  0x1f   : > { %p1273_p9 = por %p1272_p7, %p1271_p5 }
  0x20   : > { %p1267_p3 = pneg %p1266_p0 }
  0x22   : > { %p1274_p10 = pnand %p1273_p9, %p1267_p3 }
  0x24   : > { %1277 = shalt.err (!%p1274_p10)
}
  0x25   : > { %s1483_s12 = smov 128   ;;  %s1484_s20 = smov 8  }
  0x26   : > { %s1815_s2 = sld [smem:[#allocation21_spill]]  ;;  %s1289_s29 = scalar_lea.vmem %s326_s28, 512 }
  0x27   : > { %p1290_p1 = scmp.ne.s32.totalorder %s326_s28, %s1289_s29  ;;  %p1297_p2 = scmp.lt.s32.totalorder %s326_s28, %s326_s28 }
  0x28   : > { %p1298_p6 = scmp.lt.s32.totalorder %s1289_s29, %s1289_s29 }
  0x29   : > { %p1292_p13 = pnand %p1290_p1, %p1254_p12 }
  0x2a   : > { %p1299_p5 = por %p1298_p6, %p1297_p2 }
  0x2b   : > { %p1293_p0 = pneg %p1292_p13 }
  0x2c   : > { %1165 = dma.hbm_to_vmem [thread:$0]  (!%p1604_p11), %s1815_s2, 512, %s310_s25, [#allocation6], %s1483_s12, %s1483_s12, %s1484_s20  }
  0x2d   : > { %p1300_p3 = pnand %p1299_p5, %p1293_p0 }
  0x2f   : > { %1303 = shalt.err (!%p1300_p3)
}
  0x30   : > { %s1816_s4 = sld [smem:[#allocation22_spill]]  ;;  %s1315_s25 = scalar_lea.vmem %s342_s30, 512 }
  0x31   : > { %p1316_p10 = scmp.ne.s32.totalorder %s342_s30, %s1315_s25  ;;  %p1323_p9 = scmp.lt.s32.totalorder %s342_s30, %s342_s30 }
  0x32   : > { %p1324_p13 = scmp.lt.s32.totalorder %s1315_s25, %s1315_s25 }
  0x33   : > { %p1318_p7 = pnand %p1316_p10, %p1254_p12 }
  0x34   : > { %p1325_p4 = por %p1324_p13, %p1323_p9 }
  0x35   : > { %p1319_p1 = pneg %p1318_p7 }
  0x36   : > { %1168 = dma.hbm_to_vmem [thread:$0]  (!%p1604_p11), %s1816_s4, 512, %s326_s28, [#allocation9], %s1483_s12, %s1483_s12, %s1484_s20  }
  0x37   : > { %p1326_p2 = pnand %p1325_p4, %p1319_p1 }
  0x39   : > { %1329 = shalt.err (!%p1326_p2)
}
  0x3a   : > { %s1817_s6 = sld [smem:[#allocation23_spill]]  ;;  %s51_s22 = sadd.s32 1, %s1466_s15 }
  0x3b   : > { %s42_s28 = sadd.s32 1, %s1474_s17  ;;  %p58_p4 = scmp.ne.s32.totalorder %s1466_s15, %s1462_s14 }
  0x3c   : > { %p44_p6 = scmp.ge.s32.totalorder %s42_s28, 2  ;;  %p59_p12 = scmp.eq.s32.totalorder %s1478_s18, 0 }
  0x3d   : > { %p1818_p0 = scmp.eq.s32.totalorder %s1576_s19, 1  ;;  %p1186_p3 = scmp.lt.s32.totalorder %s1478_s18, 2 }
  0x3e   : > { %s1840_s28 = smov (%p44_p6, %s42_s28), 0  ;;  %p60_p10 = por %p59_p12, %p58_p4 }
  0x3f   : > { %p1641_p5 = por %p1818_p0, %p58_p4  ;;  %1820 = sst [smem:[#allocation19_spill]] %s1840_s28 }
  0x40   : > { %1171 = dma.hbm_to_vmem [thread:$0]  (!%p1604_p11), %s1817_s6, 512, %s342_s30, [#allocation9], %s1483_s12, %s1483_s12, %s1484_s20  }
  0x41   : > { %s364_s29 = sand.u32 1, %s1466_s15   ;;  %s46_s11 = ssub.s32 %s1474_s17, %s1840_s28 }
  0x42   : > { %p49_p11 = scmp.eq.s32.totalorder %s46_s11, 0  ;;  %s1058_s30 = sshll.u32 %s364_s29, 3 }
  0x43   : > { %s1059_s12 = sshll.u32 %s1474_s17, 7  ;;  %s1821_s0 = sld [smem:[#allocation20_spill]] }
  0x44   : > { %s1653_s20 = scalar_select %p49_p11, %s1466_s15, %s51_s22  }
  0x45   : > { %s368_s2 = scalar_lea.vmem [#allocation2], %s1058_s30  ;;  %p1660_p7 = pnand %p1186_p3, %p60_p10 }
  0x46   : > { %s376_s4 = sshll.u32 %s368_s2, 4  ;;  %s1667_s11 = scalar_lea.hbm %s1788_s1, %s1059_s12  ;;  %s377_s4 = int_to_ptr.vmem [resolvable:$true] %s376_s4 }
  0x47   : > { %s383_s22 = sand.u32 1, %s1478_s18   ;;  %s365_s28 = scalar_lea.sflag [#allocation3], %s364_s29 }
  0x48   : > { %p1332_p1 = pneg %p1660_p7  ;;  %s1343_s25 = scalar_lea.vmem %s377_s4, 128 }
  0x49   : > { %s374_s27 = scalar_lea.hbm %s1821_s0, %s1059_s12  ;;  %p1344_p9 = scmp.ne.s32.totalorder %s377_s4, %s1343_s25 }
  0x4a   : > { %s1485_s2 = smov [#allocation2]  }
  0x4b   : > { %p1346_p13 = pnand %p1344_p9, %p1332_p1  ;;  %s1348_s24 = sshll.u32 %s1485_s2, 4  ;;  %s1349_s24 = int_to_ptr.vmem [resolvable:$false] %s1348_s24 }
  0x4c   : > { %s1350_s0 = scalar_lea.vmem %s1349_s24, 256  ;;  %p1351_p4 = scmp.lt.s32.totalorder %s377_s4, %s1349_s24 }
  0x4d   : > { %p1347_p2 = pneg %p1346_p13  ;;  %p1352_p6 = scmp.lt.s32.totalorder %s1350_s0, %s1343_s25 }
  0x4f   : > { %p1353_p12 = por %p1352_p6, %p1351_p4 }
  0x51   : > { %p1354_p0 = pnand %p1353_p12, %p1347_p2 }
  0x53   : > { %1357 = shalt.err (!%p1354_p0)
}
  0x54   : > { %1175 = dma.hbm_to_vmem [thread:$0]  (!%p1660_p7), %s374_s27, 128, %s377_s4, %s365_s28  }
  0x55   : > { %s387_s10 = scalar_lea.vmem [#allocation5], %s1058_s30  ;;  %s384_s29 = scalar_lea.sflag [#allocation6], %s383_s22 }
  0x56   : > { %s394_s13 = sshll.u32 %s387_s10, 4  ;;  %s1486_s2 = smov [#allocation5]   ;;  %s395_s13 = int_to_ptr.vmem [resolvable:$true] %s394_s13 }
  0x57   : > { %s1371_s12 = scalar_lea.vmem %s395_s13, 128  ;;  %s1376_s24 = sshll.u32 %s1486_s2, 4  ;;  %s1377_s24 = int_to_ptr.vmem [resolvable:$false] %s1376_s24 }
  0x58   : > { %p1372_p3 = scmp.ne.s32.totalorder %s395_s13, %s1371_s12  ;;  %s1378_s0 = scalar_lea.vmem %s1377_s24, 256 }
  0x59   : > { %p1379_p9 = scmp.lt.s32.totalorder %s395_s13, %s1377_s24  ;;  %p1380_p13 = scmp.lt.s32.totalorder %s1378_s0, %s1371_s12 }
  0x5a   : > { %p1374_p10 = pnand %p1372_p3, %p1332_p1 }
  0x5b   : > { %p1381_p2 = por %p1380_p13, %p1379_p9 }
  0x5c   : > { %p1375_p11 = pneg %p1374_p10 }
  0x5e   : > { %p1382_p4 = pnand %p1381_p2, %p1375_p11 }
  0x60   : > { %1385 = shalt.err (!%p1382_p4)
}
  0x61   : > { %1178 = dma.hbm_to_vmem [thread:$0]  (!%p1660_p7), %s1667_s11, 128, %s395_s13, %s384_s29  }
  0x62   : > { %403 = sbr.rel (%p1595_p8) target bundleno = 886 (0x376), region = 60  ;;  %s1686_s4 = sand.u32 (!%p1595_p8), 1, %s1462_s14  }
  0x63   : > { %s1689_s28 = sshll.u32 (!%p1595_p8), %s1686_s4, 3  ;;  %s406_s30 = scalar_lea.sflag (!%p1595_p8), [#allocation3], %s1686_s4 }
  0x64   : > { %s409_s27 = scalar_lea.vmem (!%p1595_p8), [#allocation2], %s1689_s28  ;;  %p1823_p1 = scmp.ne.s32.totalorder (!%p1595_p8), %s1810_s21, 0 }
  0x67   : > { %1437 = dma.done.wait (%p1823_p1), %s406_s30, 128  }
  0x68   : > { %1439 = vsyncadd (%p1823_p1), %s406_s30, 4294967168  ;;  %s414_s6 = sand.u32 1, %s1576_s19   ;;  %s418_s11 = scalar_lea.vmem [#allocation5], %s1689_s28 }
  0x69   : > { %s415_s23 = scalar_lea.sflag [#allocation6], %s414_s6 }
  0x6a   : > { %1441 = dma.done.wait (%p1823_p1), %s415_s23, 128  }
  0x6b   : > { %1443 = vsyncadd (%p1823_p1), %s415_s23, 4294967168  ;;  %p1824_p8 = scmp.eq.s32.totalorder %s1576_s19, 0 }
  0x6d   : > { %1445 = dma.done.wait (%p1824_p8), [#allocation6], 512   ;;  %p1825_p7 = pmov %p1824_p8 }
  0x6f   : > { %1447 = vsyncadd (%p1825_p7), [#allocation6], 4294966784  ;;  %p1826_p6 = pmov %p1825_p7 }
  0x71   : > { %1449 = dma.done.wait (%p1826_p6), [#allocation9], 1024   ;;  %p1827_p12 = pmov %p1826_p6 }
  0x72   : > { %v1487_v0 = vmov 0.0   ;;  %vm1488_vm0 = vmmov 0   ;;  %v562_v1 = vld [vmem:[#allocation8 + $0x18] sm:$0xff]  ;;  %v561_v3 = vld [vmem:[#allocation8 + $0x10] sm:$0xff]  ;;  %v560_v5 = vld [vmem:[#allocation8 + $0x8] sm:$0xff]  ;;  %vm485_vm1 = vcmask 261120  }
  0x73   : > { %1451 = vsyncadd (%p1827_p12), [#allocation9], 4294966272  ;;  %1112 = vmatprep.subr.mxu1 %v1487_v0  ;;  %1101 = vmatprep.subr.mxu0 %v1487_v0  ;;  %v477_v2 = vld [vmem:[#allocation7 + $0x18] sm:$0xff]  ;;  %v476_v4 = vld [vmem:[#allocation7 + $0x10] sm:$0xff]  ;;  %vm804_vm2 = vcmask 64512   ;;  %s1079_s0 = sshll.u32 %s1470_s16, 7 }
  0x74   : > { %1120 = vmatprep.mubr.msk.f32.mxu1 %vm1488_vm0, %v1487_v0  ;;  %1109 = vmatprep.mubr.msk.f32.mxu0 %vm1488_vm0, %v1487_v0  ;;  %v475_v6 = vld [vmem:[#allocation7 + $0x8] sm:$0xff]  ;;  %v559_v7 = vld [vmem:[#allocation8] sm:$0xff]  ;;  %v473_v9 = vld [vmem:[%s418_s11] sm:$0xff]  ;;  %s471_s30 = scalar_lea.vmem [#allocation11], %s1689_s28  ;;  %s1828_s11 = sld [smem:[#allocation24_spill]] }
  0x75   : > { %1113 = vmatpush3.msra.mxu1 %v562_v1  ;;  %1102 = vmatpush3.msra.mxu0 %v477_v2  ;;  %v474_v8 = vld [vmem:[#allocation7] sm:$0xff]  ;;  %v646_v21 = vld [vmem:[#allocation10 + $0x18] sm:$0xff]  ;;  %v645_v22 = vld [vmem:[#allocation10 + $0x10] sm:$0xff]  ;;  %s906_s21 = scalar_lea.sflag [#allocation4], %s1686_s4  ;;  %s1489_s25 = smov [#allocation11]  }
  0x76   : > { %1114 = vmatprep.subr.mxu1 %v1487_v0  ;;  %1103 = vmatprep.subr.mxu0 %v1487_v0  ;;  %v1717_v10 = vld [vmem:[%s409_s27] sm:$0xff]  ;;  %s920_s27 = sshll.u32 %s471_s30, 4  ;;  %s1390_s16 = sshll.u32 %s1489_s25, 4  ;;  %s921_s27 = int_to_ptr.vmem [resolvable:$true] %s920_s27  ;;  %s1391_s16 = int_to_ptr.vmem [resolvable:$false] %s1390_s16 }
  0x77   : > { %1115 = vmatpush3.msra.mxu1 %v561_v3  ;;  %1104 = vmatpush3.msra.mxu0 %v476_v4  ;;  %v1071_v11 = vld [vmem:[%s1792_s5] ss:$0 sm:$0xff]  ;;  %v644_v23 = vld [vmem:[#allocation10 + $0x8] sm:$0xff]  ;;  %s1386_s22 = scalar_lea.vmem %s921_s27, 128  ;;  %s1392_s28 = scalar_lea.vmem %s1391_s16, 256 }
  0x78   : > { %1116 = vmatprep.subr.mxu1 %v1487_v0  ;;  %1105 = vmatprep.subr.mxu0 %v1487_v0  ;;  %v1069_v12 = vld [vmem:[%s1790_s3] ss:$0 sm:$0xff]  ;;  %p1387_p0 = scmp.ne.s32.totalorder %s921_s27, %s1386_s22  ;;  %p1393_p11 = scmp.lt.s32.totalorder %s921_s27, %s1391_s16 }
  0x79   : > { %1117 = vmatpush3.msra.mxu1 %v560_v5  ;;  %1106 = vmatpush3.msra.mxu0 %v475_v6  ;;  %v1075_v15 = vld [vmem:[%s1795_s8] ss:$0 sm:$0xff]  ;;  %p1394_p9 = scmp.lt.s32.totalorder %s1392_s28, %s1386_s22 }
  0x7a   : > { %1118 = vmatprep.subr.mxu1 %v1487_v0  ;;  %1107 = vmatprep.subr.mxu0 %v1487_v0  ;;  %v643_v24 = vld [vmem:[#allocation10] sm:$0xff]  ;;  %s918_s19 = scalar_lea.hbm %s1828_s11, %s1079_s0  ;;  %p1388_p3 = pnand %p1387_p0, %p1641_p5 }
  0x7b   : > { %1119 = vmatpush3.msra.mxu1 %v559_v7  ;;  %1108 = vmatpush3.msra.mxu0 %v474_v8  ;;  %v1073_v28 = vld [vmem:[%s1794_s7] ss:$0 sm:$0xff]  ;;  %p1395_p13 = por %p1394_p9, %p1393_p11 }
  0x7c   : > { %1121 = vmatmul.mubr.msk.f32.vlgmr.msra.gmra.mxu1 %vm485_vm1, %v473_v9  ;;  %1110 = vmatmul.mubr.msk.f32.vlgmr.msra.gmra.mxu0 %vm485_vm1, %v1717_v10  ;;  %v1076_v44 = vld [vmem:[%s1796_s9] ss:$0 sm:$0xff]  ;;  %p1389_p10 = pneg %p1388_p3 }
  0x7d   : > { %1134 = vmatprep.subr.mxu1 %v1487_v0  ;;  %1136 = vmatprep.mubr.msk.f32.mxu1 %vm1488_vm0, %v1487_v0 }
  0x7e   : > { %1123 = vmatprep.subr.mxu0 %v1487_v0  ;;  %1131 = vmatprep.mubr.msk.f32.mxu0 %vm1488_vm0, %v1487_v0  ;;  %p1396_p2 = pnand %p1395_p13, %p1389_p10 }
  0x7f   : > { %1124 = vmatpush3.msra.mxu0 %v646_v21 }
  0x80   : > { %1125 = vmatprep.subr.mxu0 %v1487_v0 }
  0x81   : > { %1126 = vmatpush3.msra.mxu0 %v645_v22 }
  0x82   : > { %1127 = vmatprep.subr.mxu0 %v1487_v0 }
  0x83   : > { %1128 = vmatpush3.msra.mxu0 %v644_v23 }
  0x84   : > { %1129 = vmatprep.subr.mxu0 %v1487_v0 }
  0x85   : > { %1130 = vmatpush3.msra.mxu0 %v643_v24 }
  0x86   : > { %1132 = vmatmul.mubr.msk.f32.vlgmr.msra.gmra.mxu0 %vm485_vm1, %v473_v9 }
 0x13c   : > { %v639_v13 = vpop.f32.mrf.mxu1  ;;  %v555_v14 = vpop.f32.mrf.mxu0 }
 0x13d   : > { %v640_v16 = vadd.f32 %v1071_v11, %v639_v13  ;;  %v556_v17 = vadd.f32 %v1069_v12, %v555_v14 }
 0x13e   : > { %v1122_v18 = vpop.f32.mrf.mxu1  ;;  %v1111_v19 = vpop.f32.mrf.mxu0 }
 0x13f   : > { %1135 = vmatpush3.xpose.msra.mxu1 %v640_v16  ;;  %v801_v20 = vmul.f32 %v1075_v15, %v556_v17 }
 0x140   : > { %1139 = vmatprep.subr.mxu1 %v1487_v0 }
 0x141   : > { %802 = vadd.xlane.f32.xlu0 %v801_v20 }
 0x142   : > { %1137 = vmatmul.mubr.f32.vlgmr.msra.gmra.mxu1 %v556_v17 }
 0x143   : > { %1141 = vmatprep.mubr.msk.f32.mxu1 %vm1488_vm0, %v1487_v0 }
 0x146   : > { %v720_v29 = vpop.f32.mrf.mxu0 }
 0x147   : > { %v721_v30 = vadd.f32 %v1073_v28, %v720_v29 }
 0x148   : > { %v1133_v31 = vpop.f32.mrf.mxu0 }
 0x149   : > { %1140 = vmatpush3.msra.mxu1 %v721_v30 }
 0x1ca   : > { %v803_v32 = vpop.xlane.xlu0 %802 }
 0x202   : > { %v790_v25 = vpop.f32.mrf.mxu1 }
 0x203   : > { %v805_v26 = vsel %vm804_vm2, %v790_v25, -inf }
 0x204   : > { %806 = vmax.xlane.f32.xlu0 %v805_v26  ;;  %v1138_v27 = vpop.f32.mrf.mxu1 }
 0x28d   : > { %v807_v33 = vpop.xlane.xlu0 %806 }
 0x28e   : > { %v808_v34 = vmax.f32 %v807_v33, %v803_v32 }
 0x290   : > { %v809_v35 = vsub.f32 %v790_v25, %v808_v34  ;;  %v812_v36 = vsub.f32 %v803_v32, %v808_v34 }
 0x292   : > { %v810_v37 = vmul.f32 1.442695, %v809_v35  ;;  %v813_v40 = vmul.f32 1.442695, %v812_v36 }
 0x294   : > { %1246 = vpow2.f32 %v810_v37 }
 0x295   : > { %1248 = vpow2.f32 %v813_v40 }
 0x2a1   : > { %v1247_v38 = vpop.eup %1246 }
 0x2a2   : > { %1142 = vmatmul.mubr.msk.f32.vlgmr.msra.gmra.mxu1 %vm804_vm2, %v1247_v38  ;;  %v815_v39 = vsel %vm804_vm2, %v1247_v38, 0.0  ;;  %v1249_v42 = vpop.eup %1248 }
 0x2a3   : > { %816 = vadd.xlane.f32.xlu1 %v815_v39  ;;  %v826_v45 = vmul.f32 %v1249_v42, %v1076_v44 }
 0x32c   : > { %v817_v41 = vpop.xlane.xlu1 %816 }
 0x32d   : > { %v818_v43 = vadd.f32 %v1249_v42, %v817_v41 }
 0x32f   : > { %1250 = vrcp.f32 %v818_v43 }
 0x33c   : > { %v1251_v48 = vpop.eup %1250 }
 0x362   : > { %v896_v46 = vpop.f32.mrf.mxu1 }
 0x363   : > { %v900_v47 = vadd.f32 %v896_v46, %v826_v45 }
 0x364   : > { %v1143_v49 = vpop.f32.mrf.mxu1 }
 0x365   : > { %v902_v50 = vmul.f32 %v1251_v48, %v900_v47 }
 0x367   : > { %v903_v51 = vadd.f32 %v902_v50, %v1717_v10 }
 0x369   : > { %904 = vst.msk [vmem:[%s471_s30] sm:$0xff] %vm485_vm1, %v903_v51 }
 0x36a   : > { %1399 = shalt.err (!%p1396_p2)
}
 0x36b   : > { %s1400_s10 = scalar_lea.hbm %s918_s19, 128  ;;  %s1404_s29 = scalar_lea.hbm %s1828_s11, 256 }
 0x36c   : > { %p1401_p4 = scmp.ne.s32.totalorder %s918_s19, %s1400_s10  ;;  %p1405_p7 = scmp.lt.s32.totalorder %s918_s19, %s1828_s11 }
 0x36d   : > { %p1406_p6 = scmp.lt.s32.totalorder %s1404_s29, %s1400_s10 }
 0x36e   : > { %p1402_p1 = pnand %p1401_p4, %p1641_p5 }
 0x36f   : > { %p1407_p12 = por %p1406_p6, %p1405_p7 }
 0x370   : > { %p1403_p8 = pneg %p1402_p1 }
 0x372   : > { %p1408_p0 = pnand %p1407_p12, %p1403_p8 }
 0x374   : > { %1411 = shalt.err (!%p1408_p0)
}
 0x375   : > { %1160 = dma.vmem_to_hbm [thread:$0]  (%p1641_p5), %s921_s27, 128, %s918_s19, %s906_s21  }
 0x376 PF: > { %s1829_s24 = sld [smem:[#allocation17_spill]]  ;;  %p1832_p10 = scmp.ge.s32.totalorder %s1478_s18, 2 }
 0x377   : > { %s1830_s0 = sld [smem:[#allocation18_spill]] }
 0x37c   : > { %s932_s30 = sand.u32 1, %s1829_s24  }
 0x37d   : > { %p1831_p3 = scmp.ne.s32.totalorder %s1830_s0, 0  ;;  %s933_s6 = scalar_lea.sflag [#allocation4], %s932_s30 }
 0x37f   : > { %p1180_p11 = pnand %p1832_p10, %p1831_p3 }
 0x381   : > { %p1181_p9 = pneg %p1180_p11 }
 0x383   : > { %1453 = dma.done.wait (%p1181_p9), %s933_s6, 128  }
 0x384   : > { %1455 = vsyncadd (%p1181_p9), %s933_s6, 4294967168  ;;  %s30_s18 = sadd.s32 1, %s1478_s18   ;;  %s1833_s26 = sld [smem:[#allocation19_spill]] }
 0x385   : > { %p27_p13 = scmp.ge.s32.totalorder %s30_s18, 4   ;;  %s1834_s13 = smov %s1462_s14 }
 0x386   : > { %s1835_s14 = smov %s1466_s15  ;;  %s1836_s15 = smov %s1653_s20 }
 0x387   : > { %s1837_s16 = smov %s1474_s17  ;;  %29 = sbr.rel (!%p27_p13) target bundleno = 15 (0xf), region = 130 }
 0x38a   : > { %s1838_s17 = smov %s1833_s26 }
 0x38c   :  { %938 = vsyncpa [#allocation3], 1 }
 0x38d   :  { %940 = vsyncpa [#allocation3 + $0x1], 1 }
 0x38e   :  { %941 = vsyncpa [#allocation6], 1 }
 0x38f   :  { %943 = vsyncpa [#allocation6 + $0x1], 1 }
 0x390   :  { %944 = vsyncpa [#allocation9], 1 }
 0x391   :  { %945 = vsyncpa [#allocation4], 1 }
 0x392   :  { %947 = vsyncpa [#allocation4 + $0x1], 1 }

</bundles_post_ra>
